<compile_context>
chip_gen: v5e
topology: v5e:2x2
jax: 0.10.0
libtpu: 0.0.40
codegen_flags: <defaults>
</compile_context>

<pallas_src>
import functools
import math

import jax
import jax.numpy as jnp
import numpy as np
from jax.experimental import pallas as pl
from jax.experimental.pallas import tpu as pltpu

LANE = 128


def _round_up(x, m):
    return ((x + m - 1) // m) * m


# ----------------------------------------------------------------------------
# activations (mirrors get_activation: gelu / lrelu / mish / swish)
# ----------------------------------------------------------------------------
def make_activation(name, leak=0.2):
    if name == "lrelu":
        return lambda x: jnp.where(x > 0, x, leak * x)
    if name == "gelu":
        c = math.sqrt(2.0 / math.pi)
        return lambda x: 0.5 * x * (1.0 + jnp.tanh(c * (x + 0.044715 * x * x * x)))
    if name == "swish":
        return lambda x: x * (1.0 / (1.0 + jnp.exp(-x)))
    if name == "mish":
        return lambda x: x * jnp.tanh(jnp.log1p(jnp.exp(-jnp.abs(x))) + jnp.maximum(x, 0.0))
    raise ValueError(f"unknown activation {name}")


# ----------------------------------------------------------------------------
# one-time parameter preparation (hoisted out of the forward path)
# ----------------------------------------------------------------------------
def prepare_params(params, *, compute_dtype=jnp.float32):
    """Transpose torch (out,in) weights to lane-dense (in,out) tiles, pad the
    final layer to 128 output lanes, reshape biases to (1,N).  Call once."""
    nz = params["w1"].shape[1]
    ndf = params["w1"].shape[0]
    nez = params["w3"].shape[0]
    nez_p = _round_up(nez, LANE)

    w1 = jnp.transpose(params["w1"]).astype(compute_dtype)          # (nz,  ndf)
    w2 = jnp.transpose(params["w2"]).astype(compute_dtype)          # (ndf, ndf)
    w3 = jnp.transpose(params["w3"]).astype(compute_dtype)          # (ndf, nez)
    w3 = jnp.pad(w3, ((0, 0), (0, nez_p - nez)))                    # zero cols
    b1 = params["b1"].reshape(1, ndf).astype(jnp.float32)
    b2 = params["b2"].reshape(1, ndf).astype(jnp.float32)
    # padded bias columns get a huge negative value so they never contribute
    # to the in-kernel logsumexp; the logits path slices them off anyway.
    b3 = jnp.pad(params["b3"].reshape(1, nez).astype(jnp.float32),
                 ((0, 0), (0, nez_p - nez)), constant_values=-1e30)
    return dict(w1=w1, b1=b1, w2=w2, b2=b2, w3=w3, b3=b3,
                nz=nz, ndf=ndf, nez=nez, nez_p=nez_p,
                compute_dtype=compute_dtype)


# ----------------------------------------------------------------------------
# Pallas kernel: one batch tile of the whole EBM MLP (+ optional logsumexp)
# ----------------------------------------------------------------------------
def netE_kernel(z_ref, w1_ref, b1_ref, w2_ref, b2_ref, w3_ref, b3_ref,
                out_ref, *, act, cls_output):
    """z_ref: (Bt, nz); w*: (K, N) lane-dense; b*: (1, N) f32;
       out_ref: (Bt, nez_p) logits  or  (Bt, 1) energy."""
    cdt = w1_ref.dtype  # MXU operand dtype (f32 or bf16); accumulate in f32
    h = jnp.dot(z_ref[...], w1_ref[...], preferred_element_type=jnp.float32)
    h = act(h + b1_ref[...])
    h = jnp.dot(h.astype(cdt), w2_ref[...], preferred_element_type=jnp.float32)
    h = act(h + b2_ref[...])
    logits = jnp.dot(h.astype(cdt), w3_ref[...],
                     preferred_element_type=jnp.float32) + b3_ref[...]
    if cls_output:
        out_ref[...] = logits.astype(out_ref.dtype)
    else:
        # logsumexp over the class (lane) axis; padded columns hold -1e30 and
        # contribute exactly 0.
        m = jnp.max(logits, axis=-1, keepdims=True)
        s = jnp.sum(jnp.exp(logits - m), axis=-1, keepdims=True)
        out_ref[...] = (m + jnp.log(s)).astype(out_ref.dtype)


# ----------------------------------------------------------------------------
# wrapper (mirrors _netE.forward)
# ----------------------------------------------------------------------------
def netE_forward(z, prep, *, activation="lrelu", leak=0.2,
                 cls_output=False, block_b=2048):
    act = make_activation(activation, leak)
    nz, ndf = prep["nz"], prep["ndf"]
    nez, nez_p = prep["nez"], prep["nez_p"]
    cdt = prep["compute_dtype"]

    # z.squeeze() then treat last dim as feature dim.
    z2 = jnp.reshape(jnp.squeeze(z), (-1, nz)).astype(cdt)
    B = z2.shape[0]

    # Batch tile: as large as possible (fewer grid steps = less per-step
    # overhead), but keep >=2 tiles when there is plenty of work so the
    # "parallel" batch axis can shard across v7x's two TensorCores.
    bb = min(_round_up(block_b, 8), _round_up(B, 8))
    if pl.cdiv(B, bb) == 1 and B >= 512:
        bb = _round_up(pl.cdiv(B, 2), 8)
    grid = (pl.cdiv(B, bb),)

    if cls_output:
        out_shape = jax.ShapeDtypeStruct((B, nez_p), jnp.float32)
        out_spec = pl.BlockSpec((bb, nez_p), lambda i: (i, 0))
    else:
        out_shape = jax.ShapeDtypeStruct((B, 1), jnp.float32)
        out_spec = pl.BlockSpec((bb, 1), lambda i: (i, 0))

    kernel = functools.partial(netE_kernel, act=act, cls_output=cls_output)

    out = pl.pallas_call(
        kernel,
        out_shape=out_shape,
        grid_spec=pltpu.PrefetchScalarGridSpec(
            num_scalar_prefetch=0,
            grid=grid,
            in_specs=[
                pl.BlockSpec((bb, nz), lambda i: (i, 0)),       # z tile
                pl.BlockSpec((nz, ndf), lambda i: (0, 0)),      # w1
                pl.BlockSpec((1, ndf), lambda i: (0, 0)),       # b1
                pl.BlockSpec((ndf, ndf), lambda i: (0, 0)),     # w2
                pl.BlockSpec((1, ndf), lambda i: (0, 0)),       # b2
                pl.BlockSpec((ndf, nez_p), lambda i: (0, 0)),   # w3 (padded)
                pl.BlockSpec((1, nez_p), lambda i: (0, 0)),     # b3 (padded)
            ],
            out_specs=out_spec,
        ),
        compiler_params=pltpu.CompilerParams(
            dimension_semantics=("parallel",)),
    )(z2, prep["w1"], prep["b1"], prep["w2"], prep["b2"],
      prep["w3"], prep["b3"])

    if cls_output:
        return out[:, :nez]
    return out[:, 0]


def compute_mi(z, prep, *, activation="lrelu", leak=0.2, eps=1e-15):
    """Mirrors _netE.compute_mi; uses the Pallas kernel for the logits."""
    logits = netE_forward(z, prep, activation=activation, leak=leak,
                          cls_output=True)
    log_p_y_z = jax.nn.log_softmax(logits, axis=-1)
    p_y_z = jnp.exp(log_p_y_z)
    log_p_y = jnp.log(jnp.mean(p_y_z, axis=0) + eps)
    H_y = -jnp.sum(jnp.exp(log_p_y) * log_p_y)
    H_y_z = -jnp.sum(log_p_y_z * p_y_z) / logits.shape[0]
    return H_y - H_y_z


# ----------------------------------------------------------------------------
# pure-JAX reference mirroring the PyTorch forward
# ----------------------------------------------------------------------------
def netE_ref(z, params, *, activation="lrelu", leak=0.2, cls_output=False):
    act = make_activation(activation, leak)
    nz = params["w1"].shape[1]
    hp = jax.lax.Precision.HIGHEST
    h = jnp.reshape(jnp.squeeze(z), (-1, nz)).astype(jnp.float32)
    h = act(jnp.dot(h, params["w1"].T, precision=hp) + params["b1"])
    h = act(jnp.dot(h, params["w2"].T, precision=hp) + params["b2"])
    logits = jnp.dot(h, params["w3"].T, precision=hp) + params["b3"]
    if cls_output:
        return logits
    return jax.scipy.special.logsumexp(logits, axis=1)


def compute_mi_ref(z, params, *, activation="lrelu", leak=0.2, eps=1e-15):
    logits = netE_ref(z, params, activation=activation, leak=leak,
                      cls_output=True)
    log_p_y_z = jax.nn.log_softmax(logits, axis=-1)
    p_y_z = jnp.exp(log_p_y_z)
    log_p_y = jnp.log(jnp.mean(p_y_z, axis=0) + eps)
    H_y = -jnp.sum(jnp.exp(log_p_y) * log_p_y)
    H_y_z = -jnp.sum(log_p_y_z * p_y_z) / logits.shape[0]
    return H_y - H_y_z


# ----------------------------------------------------------------------------
if __name__ == "__main__":
    # small shapes consistent with the module: latent nz, hidden ndf, nez classes
    B, nz, ndf, nez = 64, 16, 64, 10
    leak = 0.2

    key = jax.random.PRNGKey(0)
    ks = jax.random.split(key, 7)
    params = {
        "w1": jax.random.normal(ks[0], (ndf, nz), jnp.float32) / math.sqrt(nz),
        "b1": 0.1 * jax.random.normal(ks[1], (ndf,), jnp.float32),
        "w2": jax.random.normal(ks[2], (ndf, ndf), jnp.float32) / math.sqrt(ndf),
        "b2": 0.1 * jax.random.normal(ks[3], (ndf,), jnp.float32),
        "w3": jax.random.normal(ks[4], (nez, ndf), jnp.float32) / math.sqrt(ndf),
        "b3": 0.1 * jax.random.normal(ks[5], (nez,), jnp.float32),
    }
    # latent z as produced by a generator: (B, nz, 1, 1) -> squeeze() in forward
    z = jax.random.normal(ks[6], (B, nz, 1, 1), jnp.float32)

    # one-time weight prep, reused for every forward call
    prep = prepare_params(params)

    # energy path (default forward): logsumexp over classes
    energy = jax.block_until_ready(netE_forward(z, prep, activation="lrelu",
                                                leak=leak))
    energy_ref = netE_ref(z, params, activation="lrelu", leak=leak)
    assert energy.shape == energy_ref.shape == (B,)
    np.testing.assert_allclose(np.asarray(energy), np.asarray(energy_ref),
                               rtol=1e-3, atol=1e-3)

    # classifier path (cls_output=True): raw logits
    logits = jax.block_until_ready(netE_forward(z, prep, activation="lrelu",
                                                leak=leak, cls_output=True))
    logits_ref = netE_ref(z, params, activation="lrelu", leak=leak,
                          cls_output=True)
    assert logits.shape == logits_ref.shape == (B, nez)
    np.testing.assert_allclose(np.asarray(logits), np.asarray(logits_ref),
                               rtol=1e-3, atol=1e-3)

    # mutual-information helper (plain-JAX post-processing on kernel logits)
    mi = jax.block_until_ready(compute_mi(z, prep, activation="lrelu",
                                          leak=leak))
    mi_ref = compute_mi_ref(z, params, activation="lrelu", leak=leak)
    np.testing.assert_allclose(np.asarray(mi), np.asarray(mi_ref),
                               rtol=1e-3, atol=1e-3)

    # a second activation flavour (gelu, tanh approx) through the same kernel
    e_gelu = jax.block_until_ready(netE_forward(z, prep, activation="gelu"))
    e_gelu_ref = netE_ref(z, params, activation="gelu")
    np.testing.assert_allclose(np.asarray(e_gelu), np.asarray(e_gelu_ref),
                               rtol=1e-3, atol=1e-3)

    # ragged batch (not a multiple of the tile): exercises masked last block,
    # no host-side padding of z
    Br = 50
    z_ragged = jax.random.normal(jax.random.PRNGKey(1), (Br, nz, 1, 1),
                                 jnp.float32)
    e_rag = jax.block_until_ready(netE_forward(z_ragged, prep,
                                               activation="lrelu", leak=leak))
    e_rag_ref = netE_ref(z_ragged, params, activation="lrelu", leak=leak)
    assert e_rag.shape == (Br,)
    np.testing.assert_allclose(np.asarray(e_rag), np.asarray(e_rag_ref),
                               rtol=1e-3, atol=1e-3)

    # optional bf16 operand casting (f32 accumulation) — loose tolerance
    prep_bf16 = prepare_params(params, compute_dtype=jnp.bfloat16)
    e_bf16 = jax.block_until_ready(netE_forward(z, prep_bf16,
                                                activation="lrelu", leak=leak))
    np.testing.assert_allclose(np.asarray(e_bf16), np.asarray(energy_ref),
                               rtol=5e-2, atol=5e-2)

    print("KERNEL_OK")
</pallas_src>

<mosaic_0001>
module attributes {stable_mosaic.version = 11 : i64} {
  func.func @netE_kernel(%arg0: i32, %arg1: memref<64x16xf32, #tpu.memory_space<vmem>>, %arg2: memref<16x64xf32, #tpu.memory_space<vmem>>, %arg3: memref<1x64xf32, #tpu.memory_space<vmem>>, %arg4: memref<64x64xf32, #tpu.memory_space<vmem>>, %arg5: memref<1x64xf32, #tpu.memory_space<vmem>>, %arg6: memref<64x128xf32, #tpu.memory_space<vmem>>, %arg7: memref<1x128xf32, #tpu.memory_space<vmem>>, %arg8: memref<64x1xf32, #tpu.memory_space<vmem>>) attributes {dimension_semantics = [#tpu.dimension_semantics<parallel>], iteration_bounds = array<i64: 1>, scalar_prefetch = 0 : i64, scratch_operands = 0 : i64, tpu.core_type = #tpu.core_type<tc>, window_params = [{transform_indices = @transform_0, window_bounds = array<i64: 64, 16>}, {pipeline_mode = #tpu.pipeline_mode<synchronous>, transform_indices = @transform_1, window_bounds = array<i64: 16, 64>}, {pipeline_mode = #tpu.pipeline_mode<synchronous>, transform_indices = @transform_2, window_bounds = array<i64: 1, 64>}, {pipeline_mode = #tpu.pipeline_mode<synchronous>, transform_indices = @transform_3, window_bounds = array<i64: 64, 64>}, {pipeline_mode = #tpu.pipeline_mode<synchronous>, transform_indices = @transform_4, window_bounds = array<i64: 1, 64>}, {pipeline_mode = #tpu.pipeline_mode<synchronous>, transform_indices = @transform_5, window_bounds = array<i64: 64, 128>}, {pipeline_mode = #tpu.pipeline_mode<synchronous>, transform_indices = @transform_6, window_bounds = array<i64: 1, 128>}, {transform_indices = @transform_7, window_bounds = array<i64: 64, 1>}]} {
    %c0 = arith.constant 0 : index
    %c0_0 = arith.constant 0 : index
    %0 = vector.load %arg1[%c0, %c0_0] : memref<64x16xf32, #tpu.memory_space<vmem>>, vector<64x16xf32>
    %c0_1 = arith.constant 0 : index
    %c0_2 = arith.constant 0 : index
    %1 = vector.load %arg2[%c0_1, %c0_2] : memref<16x64xf32, #tpu.memory_space<vmem>>, vector<16x64xf32>
    %cst = arith.constant dense<0.000000e+00> : vector<64x64xf32>
    %2 = tpu.matmul %0, %1, %cst {dimension_numbers = #tpu.dot_dimension_numbers<[1], [0], [0], [1], [0, 0, 1, 1], [], []>} : vector<64x16xf32>, vector<16x64xf32>, vector<64x64xf32> -> vector<64x64xf32>
    %c0_3 = arith.constant 0 : index
    %c0_4 = arith.constant 0 : index
    %3 = vector.load %arg3[%c0_3, %c0_4] : memref<1x64xf32, #tpu.memory_space<vmem>>, vector<1x64xf32>
    %4 = vector.broadcast %3 : vector<1x64xf32> to vector<64x64xf32>
    %5 = arith.addf %2, %4 : vector<64x64xf32>
    %cst_5 = arith.constant 0.000000e+00 : f32
    %6 = vector.broadcast %cst_5 : f32 to vector<64x64xf32>
    %7 = arith.cmpf ogt, %5, %6 : vector<64x64xf32>
    %cst_6 = arith.constant 2.000000e-01 : f32
    %8 = vector.broadcast %cst_6 : f32 to vector<64x64xf32>
    %9 = arith.mulf %8, %5 : vector<64x64xf32>
    %10 = arith.select %7, %5, %9 : vector<64x64xi1>, vector<64x64xf32>
    %c0_7 = arith.constant 0 : index
    %c0_8 = arith.constant 0 : index
    %11 = vector.load %arg4[%c0_7, %c0_8] : memref<64x64xf32, #tpu.memory_space<vmem>>, vector<64x64xf32>
    %cst_9 = arith.constant dense<0.000000e+00> : vector<64x64xf32>
    %12 = tpu.matmul %10, %11, %cst_9 {dimension_numbers = #tpu.dot_dimension_numbers<[1], [0], [0], [1], [0, 0, 1, 1], [], []>} : vector<64x64xf32>, vector<64x64xf32>, vector<64x64xf32> -> vector<64x64xf32>
    %c0_10 = arith.constant 0 : index
    %c0_11 = arith.constant 0 : index
    %13 = vector.load %arg5[%c0_10, %c0_11] : memref<1x64xf32, #tpu.memory_space<vmem>>, vector<1x64xf32>
    %14 = vector.broadcast %13 : vector<1x64xf32> to vector<64x64xf32>
    %15 = arith.addf %12, %14 : vector<64x64xf32>
    %cst_12 = arith.constant 0.000000e+00 : f32
    %16 = vector.broadcast %cst_12 : f32 to vector<64x64xf32>
    %17 = arith.cmpf ogt, %15, %16 : vector<64x64xf32>
    %cst_13 = arith.constant 2.000000e-01 : f32
    %18 = vector.broadcast %cst_13 : f32 to vector<64x64xf32>
    %19 = arith.mulf %18, %15 : vector<64x64xf32>
    %20 = arith.select %17, %15, %19 : vector<64x64xi1>, vector<64x64xf32>
    %c0_14 = arith.constant 0 : index
    %c0_15 = arith.constant 0 : index
    %21 = vector.load %arg6[%c0_14, %c0_15] : memref<64x128xf32, #tpu.memory_space<vmem>>, vector<64x128xf32>
    %cst_16 = arith.constant dense<0.000000e+00> : vector<64x128xf32>
    %22 = tpu.matmul %20, %21, %cst_16 {dimension_numbers = #tpu.dot_dimension_numbers<[1], [0], [0], [1], [0, 0, 1, 1], [], []>} : vector<64x64xf32>, vector<64x128xf32>, vector<64x128xf32> -> vector<64x128xf32>
    %c0_17 = arith.constant 0 : index
    %c0_18 = arith.constant 0 : index
    %23 = vector.load %arg7[%c0_17, %c0_18] : memref<1x128xf32, #tpu.memory_space<vmem>>, vector<1x128xf32>
    %24 = vector.broadcast %23 : vector<1x128xf32> to vector<64x128xf32>
    %25 = arith.addf %22, %24 : vector<64x128xf32>
    %cst_19 = arith.constant dense<0xFF800000> : vector<64xf32>
    %26 = vector.multi_reduction <maximumf>, %25, %cst_19 [1] : vector<64x128xf32> to vector<64xf32>
    %27 = vector.shape_cast %26 : vector<64xf32> to vector<64x1xf32>
    %28 = vector.broadcast %27 : vector<64x1xf32> to vector<64x128xf32>
    %29 = arith.subf %25, %28 : vector<64x128xf32>
    %30 = math.exp %29 : vector<64x128xf32>
    %cst_20 = arith.constant dense<0.000000e+00> : vector<64xf32>
    %31 = vector.multi_reduction <add>, %30, %cst_20 [1] : vector<64x128xf32> to vector<64xf32>
    %32 = vector.shape_cast %31 : vector<64xf32> to vector<64x1xf32>
    %33 = math.log %32 : vector<64x1xf32>
    %34 = arith.addf %27, %33 : vector<64x1xf32>
    %c0_21 = arith.constant 0 : index
    %c0_22 = arith.constant 0 : index
    %35 = vector.load %arg8[%c0_21, %c0_22] : memref<64x1xf32, #tpu.memory_space<vmem>>, vector<64x1xf32>
    tpu.vector_store %arg8[%c0_21, %c0_22], %34 {strides = array<i32>} : memref<64x1xf32, #tpu.memory_space<vmem>>, vector<64x1xf32>,
    return
  }
  func.func @transform_0(%arg0: i32) -> (i32, i32) {
    %c0_i32 = arith.constant 0 : i32
    %c0_i32_0 = arith.constant 0 : i32
    return %arg0, %c0_i32 : i32, i32
  }
  func.func @transform_1(%arg0: i32) -> (i32, i32) {
    %c0_i32 = arith.constant 0 : i32
    %c0_i32_0 = arith.constant 0 : i32
    %c0_i32_1 = arith.constant 0 : i32
    return %c0_i32, %c0_i32_0 : i32, i32
  }
  func.func @transform_2(%arg0: i32) -> (i32, i32) {
    %c0_i32 = arith.constant 0 : i32
    %c0_i32_0 = arith.constant 0 : i32
    %c0_i32_1 = arith.constant 0 : i32
    return %c0_i32, %c0_i32_0 : i32, i32
  }
  func.func @transform_3(%arg0: i32) -> (i32, i32) {
    %c0_i32 = arith.constant 0 : i32
    %c0_i32_0 = arith.constant 0 : i32
    %c0_i32_1 = arith.constant 0 : i32
    return %c0_i32, %c0_i32_0 : i32, i32
  }
  func.func @transform_4(%arg0: i32) -> (i32, i32) {
    %c0_i32 = arith.constant 0 : i32
    %c0_i32_0 = arith.constant 0 : i32
    %c0_i32_1 = arith.constant 0 : i32
    return %c0_i32, %c0_i32_0 : i32, i32
  }
  func.func @transform_5(%arg0: i32) -> (i32, i32) {
    %c0_i32 = arith.constant 0 : i32
    %c0_i32_0 = arith.constant 0 : i32
    %c0_i32_1 = arith.constant 0 : i32
    return %c0_i32, %c0_i32_0 : i32, i32
  }
  func.func @transform_6(%arg0: i32) -> (i32, i32) {
    %c0_i32 = arith.constant 0 : i32
    %c0_i32_0 = arith.constant 0 : i32
    %c0_i32_1 = arith.constant 0 : i32
    return %c0_i32, %c0_i32_0 : i32, i32
  }
  func.func @transform_7(%arg0: i32) -> (i32, i32) {
    %c0_i32 = arith.constant 0 : i32
    %c0_i32_0 = arith.constant 0 : i32
    return %arg0, %c0_i32 : i32, i32
  }
}

</mosaic_0001>

<bundles_post_ra>
// kernel: tpu_custom_call.1
= control target key start
LH: loop header
LB: loop body
LE: loop exit
PB: predicated region body
PF: predicated region fallthrough
CT: control target
= control target key end

     0   :  { %12 = vsyncpa [#allocation3], 0  ;;  %s523_s27 = smov [#allocation2]   ;;  %s524_s29 = smov 128   ;;  %s688_s0 = inlined_call_operand.vmem [shape: f32[64,16], index: 0, kind: input, shape index: {}]   ;;  %s689_s1 = inlined_call_operand.vmem [shape: f32[16,64], index: 1, kind: input, shape index: {}]   ;;  %s690_s2 = inlined_call_operand.vmem [shape: f32[1,64], index: 2, kind: input, shape index: {}]   ;;  %s691_s3 = inlined_call_operand.vmem [shape: f32[64,64], index: 3, kind: input, shape index: {}]   ;;  %s692_s4 = inlined_call_operand.vmem [shape: f32[1,64], index: 4, kind: input, shape index: {}]   ;;  %s693_s5 = inlined_call_operand.hbm [shape: f32[64,128], index: 5, kind: input, shape index: {}]   ;;  %s694_s6 = inlined_call_operand.vmem [shape: f32[1,128], index: 6, kind: input, shape index: {}]   ;;  %s695_s7 = inlined_call_operand.vmem [shape: f32[64,1], index: 7, kind: output, shape index: {}]  }
   0x1   :  { %s27_s26 = sshll.u32 %s693_s5, 4  ;;  %s29_s28 = sshll.u32 %s523_s27, 4  ;;  %s28_s26 = int_to_ptr.hbm [resolvable:$true] %s27_s26  ;;  %s30_s28 = int_to_ptr.vmem [resolvable:$true] %s29_s28 }
   0x2   :  { %s525_s30 = smov 8  }
   0x3   :  { %35 = dma.hbm_to_vmem [thread:$0]  %s28_s26, 1024, %s30_s28, [#allocation3], %s524_s29, %s524_s29, %s525_s30  }
   0x4   :  { %521 = dma.done.wait [#allocation3], 1024  }
   0x5   :  { %522 = vsyncadd [#allocation3], 4294966272  ;;  %v51_v0 = vld [vmem:[%s689_s1 + $0x8] sm:$0xff]  ;;  %v50_v1 = vld [vmem:[%s689_s1] sm:$0xff]  ;;  %vm56_vm0 = vcmask 130048   ;;  %vm158_vm2 = vcmask 523264  }
   0x6   :  { %95 = vmatpush.msra.mxu0 %v51_v0  ;;  %v42_v2 = vld [vmem:[%s688_s0] sm:$0xff]  ;;  %v43_v3 = vld [vmem:[%s688_s0 + $0x8] sm:$0xff]  ;;  %v44_v4 = vld [vmem:[%s688_s0 + $0x10] sm:$0xff] }
   0x7   :  { %v45_v5 = vld [vmem:[%s688_s0 + $0x18] sm:$0xff]  ;;  %v152_v7 = vld [vmem:[%s691_s3 + $0x30] sm:$0xff]  ;;  %v151_v8 = vld [vmem:[%s691_s3 + $0x28] sm:$0xff] }
   0x8   :  { %96 = vmatpush.msra.mxu0 %v50_v1  ;;  %v153_v6 = vld [vmem:[%s691_s3 + $0x38] sm:$0xff]  ;;  %v150_v9 = vld [vmem:[%s691_s3 + $0x20] sm:$0xff]  ;;  %v47_v12 = vld [vmem:[%s688_s0 + $0x28] sm:$0xff] }
   0x9   :  { %419 = vmatmul.msk.f32.vlgmr.msra.gmra.mxu0 %vm56_vm0, %v42_v2  ;;  %191 = vmatpush.msra.mxu1 %v153_v6  ;;  %v46_v10 = vld [vmem:[%s688_s0 + $0x20] sm:$0xff]  ;;  %v149_v11 = vld [vmem:[%s691_s3 + $0x18] sm:$0xff]  ;;  %v48_v13 = vld [vmem:[%s688_s0 + $0x30] sm:$0xff] }
   0xa   :  { %443 = vmatpush.msra.mxu3 %v153_v6  ;;  %v49_v14 = vld [vmem:[%s688_s0 + $0x38] sm:$0xff]  ;;  %v148_v15 = vld [vmem:[%s691_s3 + $0x10] sm:$0xff]  ;;  %v147_v16 = vld [vmem:[%s691_s3 + $0x8] sm:$0xff] }
   0xb   :  { %192 = vmatpush.msra.mxu1 %v152_v7  ;;  %v146_v17 = vld [vmem:[%s691_s3] sm:$0xff]  ;;  %v255_v35 = vld [vmem:[#allocation2 + $0x38] sm:$0xff]  ;;  %v254_v36 = vld [vmem:[#allocation2 + $0x30] sm:$0xff] }
   0xc   :  { %444 = vmatpush.msra.mxu3 %v152_v7  ;;  %v462_v18 = vld [vmem:[%s690_s2] ss:$0 sm:$0xff]  ;;  %292 = vmatpush.msra.mxu2 %v255_v35  ;;  %v253_v38 = vld [vmem:[#allocation2 + $0x28] sm:$0xff]  ;;  %v251_v42 = vld [vmem:[#allocation2 + $0x18] sm:$0xff] }
   0xd   :  { %193 = vmatpush.msra.mxu1 %v151_v8  ;;  %v252_v40 = vld [vmem:[#allocation2 + $0x20] sm:$0xff]  ;;  %v250_v56 = vld [vmem:[#allocation2 + $0x10] sm:$0xff]  ;;  %v249_v57 = vld [vmem:[#allocation2 + $0x8] sm:$0xff] }
   0xe   :  { %445 = vmatpush.msra.mxu3 %v151_v8  ;;  %293 = vmatpush.msra.mxu2 %v254_v36  ;;  %v248_v58 = vld [vmem:[#allocation2] sm:$0xff] }
   0xf   :  { %194 = vmatpush.msra.mxu1 %v150_v9  ;;  %v463_v59 = vld [vmem:[%s692_s4] ss:$0 sm:$0xff] }
  0x10   :  { %446 = vmatpush.msra.mxu3 %v150_v9  ;;  %294 = vmatpush.msra.mxu2 %v253_v38 }
  0x11   :  { %420 = vmatmul.msk.f32.gmra.mxu0 %vm56_vm0, %v43_v3  ;;  %195 = vmatpush.msra.mxu1 %v149_v11 }
  0x12   :  { %447 = vmatpush.msra.mxu3 %v149_v11  ;;  %295 = vmatpush.msra.mxu2 %v252_v40 }
  0x13   :  { %196 = vmatpush.msra.mxu1 %v148_v15 }
  0x14   :  { %448 = vmatpush.msra.mxu3 %v148_v15  ;;  %296 = vmatpush.msra.mxu2 %v251_v42 }
  0x15   :  { %197 = vmatpush.msra.mxu1 %v147_v16 }
  0x16   :  { %449 = vmatpush.msra.mxu3 %v147_v16  ;;  %297 = vmatpush.msra.mxu2 %v250_v56 }
  0x17   :  { %198 = vmatpush.msra.mxu1 %v146_v17 }
  0x18   :  { %450 = vmatpush.msra.mxu3 %v146_v17  ;;  %298 = vmatpush.msra.mxu2 %v249_v57 }
  0x19   :  { %421 = vmatmul.msk.f32.gmra.mxu0 %vm56_vm0, %v44_v4 }
  0x1a   :  { %451 = vmatpush.msrb.mxu3 %v255_v35  ;;  %299 = vmatpush.msra.mxu2 %v248_v58 }
  0x1c   :  { %452 = vmatpush.msrb.mxu3 %v254_v36 }
  0x1e   :  { %453 = vmatpush.msrb.mxu3 %v253_v38 }
  0x20   :  { %454 = vmatpush.msrb.mxu3 %v252_v40 }
  0x21   :  { %422 = vmatmul.msk.f32.gmra.mxu0 %vm56_vm0, %v45_v5 }
  0x22   :  { %455 = vmatpush.msrb.mxu3 %v251_v42 }
  0x24   :  { %456 = vmatpush.msrb.mxu3 %v250_v56 }
  0x26   :  { %457 = vmatpush.msrb.mxu3 %v249_v57 }
  0x28   :  { %458 = vmatpush.msrb.mxu3 %v248_v58 }
  0x29   :  { %423 = vmatmul.msk.f32.gmra.mxu0 %vm56_vm0, %v46_v10 }
  0x31   :  { %424 = vmatmul.msk.f32.gmra.mxu0 %vm56_vm0, %v47_v12 }
  0x39   :  { %425 = vmatmul.msk.f32.gmra.mxu0 %vm56_vm0, %v48_v13 }
  0x41   :  { %426 = vmatmul.msk.f32.gmra.mxu0 %vm56_vm0, %v49_v14 }
  0x86   :  { %v98_v19 = vpop.f32.mrf.mxu0 }
  0x87   :  { %v99_v20 = vadd.f32 %v462_v18, %v98_v19 }
  0x89   :  { %v130_v21 = vmul.f32 0.2, %v99_v20  ;;  %vm122_vm1 = vcmp.gt.f32.partialorder %v99_v20, 0.0 }
  0x8b   :  { %v138_v22 = vsel %vm122_vm1, %v99_v20, %v130_v21 }
  0x8c   :  { %427 = vmatmul.msk.f32.vlgmr.msra.gmra.mxu1 %vm158_vm2, %v138_v22 }
  0x8e   :  { %v101_v23 = vpop.f32.mrf.mxu0 }
  0x8f   :  { %v102_v24 = vadd.f32 %v462_v18, %v101_v23 }
  0x91   :  { %v131_v25 = vmul.f32 0.2, %v102_v24  ;;  %vm123_vm3 = vcmp.gt.f32.partialorder %v102_v24, 0.0 }
  0x93   :  { %v139_v26 = vsel %vm123_vm3, %v102_v24, %v131_v25 }
  0x94   :  { %428 = vmatmul.msk.f32.gmra.mxu1 %vm158_vm2, %v139_v26 }
  0x96   :  { %v104_v27 = vpop.f32.mrf.mxu0 }
  0x97   :  { %v105_v28 = vadd.f32 %v462_v18, %v104_v27 }
  0x99   :  { %v132_v29 = vmul.f32 0.2, %v105_v28  ;;  %vm124_vm4 = vcmp.gt.f32.partialorder %v105_v28, 0.0 }
  0x9b   :  { %v140_v30 = vsel %vm124_vm4, %v105_v28, %v132_v29  ;;  %v464_v28 = vld [vmem:[%s694_s6] ss:$0 sm:$0xff] }
  0x9c   :  { %429 = vmatmul.msk.f32.gmra.mxu1 %vm158_vm2, %v140_v30 }
  0x9e   :  { %v107_v31 = vpop.f32.mrf.mxu0 }
  0x9f   :  { %v108_v32 = vadd.f32 %v462_v18, %v107_v31 }
  0xa1   :  { %v133_v33 = vmul.f32 0.2, %v108_v32  ;;  %vm125_vm5 = vcmp.gt.f32.partialorder %v108_v32, 0.0 }
  0xa3   :  { %v141_v34 = vsel %vm125_vm5, %v108_v32, %v133_v33 }
  0xa4   :  { %430 = vmatmul.msk.f32.gmra.mxu1 %vm158_vm2, %v141_v34 }
  0xa6   :  { %v110_v37 = vpop.f32.mrf.mxu0 }
  0xa7   :  { %v111_v39 = vadd.f32 %v462_v18, %v110_v37 }
  0xa9   :  { %v134_v41 = vmul.f32 0.2, %v111_v39  ;;  %vm126_vm6 = vcmp.gt.f32.partialorder %v111_v39, 0.0 }
  0xab   :  { %v142_v43 = vsel %vm126_vm6, %v111_v39, %v134_v41 }
  0xac   :  { %431 = vmatmul.msk.f32.gmra.mxu1 %vm158_vm2, %v142_v43 }
  0xae   :  { %v113_v44 = vpop.f32.mrf.mxu0 }
  0xaf   :  { %v114_v45 = vadd.f32 %v462_v18, %v113_v44 }
  0xb1   :  { %v135_v46 = vmul.f32 0.2, %v114_v45  ;;  %vm127_vm7 = vcmp.gt.f32.partialorder %v114_v45, 0.0 }
  0xb3   :  { %v143_v47 = vsel %vm127_vm7, %v114_v45, %v135_v46 }
  0xb4   :  { %432 = vmatmul.msk.f32.gmra.mxu1 %vm158_vm2, %v143_v47 }
  0xb6   :  { %v116_v48 = vpop.f32.mrf.mxu0 }
  0xb7   :  { %v117_v49 = vadd.f32 %v462_v18, %v116_v48 }
  0xb9   :  { %v136_v50 = vmul.f32 0.2, %v117_v49  ;;  %vm128_vm8 = vcmp.gt.f32.partialorder %v117_v49, 0.0 }
  0xbb   :  { %v144_v51 = vsel %vm128_vm8, %v117_v49, %v136_v50 }
  0xbc   :  { %433 = vmatmul.msk.f32.vlgmr.msra.gmra.mxu3 %vm158_vm2, %v144_v51 }
  0xbe   :  { %v119_v52 = vpop.f32.mrf.mxu0 }
  0xbf   :  { %v120_v53 = vadd.f32 %v462_v18, %v119_v52 }
  0xc1   :  { %v137_v54 = vmul.f32 0.2, %v120_v53  ;;  %vm129_vm9 = vcmp.gt.f32.partialorder %v120_v53, 0.0 }
  0xc3   :  { %v145_v55 = vsel %vm129_vm9, %v120_v53, %v137_v54 }
  0xc4   :  { %434 = vmatmul.msk.f32.gmra.mxu3 %vm158_vm2, %v145_v55 }
 0x109   :  { %v200_v60 = vpop.f32.mrf.mxu1 }
 0x10a   :  { %v201_v61 = vadd.f32 %v463_v59, %v200_v60 }
 0x10c   :  { %v232_v62 = vmul.f32 0.2, %v201_v61  ;;  %vm224_vm10 = vcmp.gt.f32.partialorder %v201_v61, 0.0 }
 0x10e   :  { %v240_v63 = vsel %vm224_vm10, %v201_v61, %v232_v62 }
 0x10f   :  { %435 = vmatmul.msk.f32.vlgmr.msra.gmra.mxu2 %vm158_vm2, %v240_v63 }
 0x111   :  { %v203_v0 = vpop.f32.mrf.mxu1 }
 0x112   :  { %v204_v1 = vadd.f32 %v463_v59, %v203_v0 }
 0x114   :  { %v233_v2 = vmul.f32 0.2, %v204_v1  ;;  %vm225_vm11 = vcmp.gt.f32.partialorder %v204_v1, 0.0 }
 0x116   :  { %v241_v3 = vsel %vm225_vm11, %v204_v1, %v233_v2 }
 0x117   :  { %436 = vmatmul.msk.f32.gmra.mxu2 %vm158_vm2, %v241_v3 }
 0x119   :  { %v206_v4 = vpop.f32.mrf.mxu1 }
 0x11a   :  { %v207_v5 = vadd.f32 %v463_v59, %v206_v4 }
 0x11c   :  { %v234_v6 = vmul.f32 0.2, %v207_v5  ;;  %vm226_vm12 = vcmp.gt.f32.partialorder %v207_v5, 0.0 }
 0x11e   :  { %v242_v7 = vsel %vm226_vm12, %v207_v5, %v234_v6 }
 0x11f   :  { %437 = vmatmul.msk.f32.gmra.mxu2 %vm158_vm2, %v242_v7 }
 0x121   :  { %v209_v8 = vpop.f32.mrf.mxu1 }
 0x122   :  { %v210_v9 = vadd.f32 %v463_v59, %v209_v8 }
 0x124   :  { %v235_v10 = vmul.f32 0.2, %v210_v9  ;;  %vm227_vm13 = vcmp.gt.f32.partialorder %v210_v9, 0.0 }
 0x126   :  { %v243_v11 = vsel %vm227_vm13, %v210_v9, %v235_v10 }
 0x127   :  { %438 = vmatmul.msk.f32.gmra.mxu2 %vm158_vm2, %v243_v11 }
 0x129   :  { %v212_v12 = vpop.f32.mrf.mxu1 }
 0x12a   :  { %v213_v13 = vadd.f32 %v463_v59, %v212_v12 }
 0x12c   :  { %v236_v14 = vmul.f32 0.2, %v213_v13  ;;  %vm228_vm14 = vcmp.gt.f32.partialorder %v213_v13, 0.0 }
 0x12e   :  { %v244_v15 = vsel %vm228_vm14, %v213_v13, %v236_v14 }
 0x12f   :  { %439 = vmatmul.msk.f32.gmra.mxu2 %vm158_vm2, %v244_v15 }
 0x131   :  { %v215_v16 = vpop.f32.mrf.mxu1 }
 0x132   :  { %v216_v17 = vadd.f32 %v463_v59, %v215_v16 }
 0x134   :  { %v237_v18 = vmul.f32 0.2, %v216_v17  ;;  %vm229_vm15 = vcmp.gt.f32.partialorder %v216_v17, 0.0 }
 0x136   :  { %v245_v19 = vsel %vm229_vm15, %v216_v17, %v237_v18 }
 0x137   :  { %440 = vmatmul.msk.f32.gmra.mxu2 %vm158_vm2, %v245_v19 }
 0x13f   :  { %v218_v20 = vpop.f32.mrf.mxu3 }
 0x140   :  { %v219_v21 = vadd.f32 %v463_v59, %v218_v20 }
 0x142   :  { %vm230_vm0 = vcmp.gt.f32.partialorder %v219_v21, 0.0  ;;  %v238_v22 = vmul.f32 0.2, %v219_v21 }
 0x144   :  { %v246_v23 = vsel %vm230_vm0, %v219_v21, %v238_v22 }
 0x145   :  { %441 = vmatmul.msk.f32.vlgmr.msrb.gmra.mxu3 %vm158_vm2, %v246_v23 }
 0x147   :  { %v221_v24 = vpop.f32.mrf.mxu3 }
 0x148   :  { %v222_v25 = vadd.f32 %v463_v59, %v221_v24 }
 0x14a   :  { %v239_v26 = vmul.f32 0.2, %v222_v25  ;;  %vm231_vm1 = vcmp.gt.f32.partialorder %v222_v25, 0.0 }
 0x14c   :  { %v247_v27 = vsel %vm231_vm1, %v222_v25, %v239_v26 }
 0x14d   :  { %442 = vmatmul.msk.f32.gmra.mxu3 %vm158_vm2, %v247_v27  ;;  %vm405_vm2 = vcmask 7168  }
 0x192   :  { %v301_v29 = vpop.f32.mrf.mxu2 }
 0x193   :  { %v302_v30 = vadd.f32 %v464_v28, %v301_v29 }
 0x195   :  { %325 = vmax.xlane.f32.xlu0 %v302_v30 }
 0x19a   :  { %v304_v31 = vpop.f32.mrf.mxu2 }
 0x19b   :  { %v305_v32 = vadd.f32 %v464_v28, %v304_v31 }
 0x19d   :  { %327 = vmax.xlane.f32.xlu0 %v305_v32 }
 0x1a2   :  { %v307_v33 = vpop.f32.mrf.mxu2 }
 0x1a3   :  { %v308_v34 = vadd.f32 %v464_v28, %v307_v33 }
 0x1a5   :  { %329 = vmax.xlane.f32.xlu1 %v308_v34 }
 0x1aa   :  { %v310_v35 = vpop.f32.mrf.mxu2 }
 0x1ab   :  { %v311_v36 = vadd.f32 %v464_v28, %v310_v35 }
 0x1ad   :  { %331 = vmax.xlane.f32.xlu1 %v311_v36 }
 0x1b2   :  { %v313_v37 = vpop.f32.mrf.mxu2 }
 0x1b3   :  { %v314_v38 = vadd.f32 %v464_v28, %v313_v37 }
 0x1b5   :  { %333 = vmax.xlane.f32.xlu2 %v314_v38 }
 0x1ba   :  { %v316_v39 = vpop.f32.mrf.mxu2 }
 0x1bb   :  { %v317_v40 = vadd.f32 %v464_v28, %v316_v39 }
 0x1bd   :  { %335 = vmax.xlane.f32.xlu2 %v317_v40 }
 0x1c8   :  { %v319_v41 = vpop.f32.mrf.mxu3 }
 0x1c9   :  { %v320_v42 = vadd.f32 %v464_v28, %v319_v41 }
 0x1cb   :  { %337 = vmax.xlane.f32.xlu0 %v320_v42 }
 0x1d0   :  { %v322_v43 = vpop.f32.mrf.mxu3 }
 0x1d1   :  { %v323_v44 = vadd.f32 %v464_v28, %v322_v43 }
 0x1d3   :  { %339 = vmax.xlane.f32.xlu1 %v323_v44 }
 0x208   :  { %v326_v45 = vpop.xlane.xlu0 %325 }
 0x209   :  { %v341_v46 = vsub.f32 %v302_v30, %v326_v45 }
 0x20b   :  { %v349_v47 = vmul.f32 1.442695, %v341_v46 }
 0x20d   :  { %465 = vpow2.f32 %v349_v47 }
 0x210   :  { %v328_v48 = vpop.xlane.xlu0 %327 }
 0x211   :  { %v342_v49 = vsub.f32 %v305_v32, %v328_v48 }
 0x213   :  { %v466_v50 = vpop.eup %465  ;;  %v351_v51 = vmul.f32 1.442695, %v342_v49 }
 0x214   :  { %365 = vadd.xlane.f32.xlu2 %v466_v50 }
 0x215   :  { %467 = vpow2.f32 %v351_v51 }
 0x218   :  { %v330_v52 = vpop.xlane.xlu1 %329 }
 0x219   :  { %v343_v53 = vsub.f32 %v308_v34, %v330_v52 }
 0x21b   :  { %v468_v54 = vpop.eup %467  ;;  %v353_v55 = vmul.f32 1.442695, %v343_v53 }
 0x21c   :  { %367 = vadd.xlane.f32.xlu0 %v468_v54 }
 0x21d   :  { %469 = vpow2.f32 %v353_v55 }
 0x220   :  { %v332_v56 = vpop.xlane.xlu1 %331 }
 0x221   :  { %v344_v57 = vsub.f32 %v311_v36, %v332_v56 }
 0x223   :  { %v470_v58 = vpop.eup %469  ;;  %v355_v59 = vmul.f32 1.442695, %v344_v57 }
 0x224   :  { %369 = vadd.xlane.f32.xlu1 %v470_v58 }
 0x225   :  { %471 = vpow2.f32 %v355_v59 }
 0x228   :  { %v334_v60 = vpop.xlane.xlu2 %333 }
 0x229   :  { %v345_v61 = vsub.f32 %v314_v38, %v334_v60 }
 0x22b   :  { %v472_v62 = vpop.eup %471  ;;  %v357_v63 = vmul.f32 1.442695, %v345_v61 }
 0x22c   :  { %371 = vadd.xlane.f32.xlu2 %v472_v62 }
 0x22d   :  { %473 = vpow2.f32 %v357_v63 }
 0x230   :  { %v336_v0 = vpop.xlane.xlu2 %335 }
 0x231   :  { %v346_v1 = vsub.f32 %v317_v40, %v336_v0 }
 0x233   :  { %v474_v2 = vpop.eup %473  ;;  %v359_v3 = vmul.f32 1.442695, %v346_v1 }
 0x234   :  { %373 = vadd.xlane.f32.xlu0 %v474_v2 }
 0x235   :  { %475 = vpow2.f32 %v359_v3 }
 0x23b   :  { %v476_v4 = vpop.eup %475 }
 0x23c   :  { %375 = vadd.xlane.f32.xlu1 %v476_v4 }
 0x23e   :  { %v338_v5 = vpop.xlane.xlu0 %337 }
 0x23f   :  { %v347_v6 = vsub.f32 %v320_v42, %v338_v5 }
 0x241   :  { %v361_v7 = vmul.f32 1.442695, %v347_v6 }
 0x243   :  { %477 = vpow2.f32 %v361_v7 }
 0x246   :  { %v340_v8 = vpop.xlane.xlu1 %339 }
 0x247   :  { %v348_v9 = vsub.f32 %v323_v44, %v340_v8 }
 0x249   :  { %v478_v10 = vpop.eup %477  ;;  %v363_v11 = vmul.f32 1.442695, %v348_v9 }
 0x24a   :  { %377 = vadd.xlane.f32.xlu2 %v478_v10 }
 0x24b   :  { %479 = vpow2.f32 %v363_v11 }
 0x251   :  { %v480_v12 = vpop.eup %479 }
 0x252   :  { %379 = vadd.xlane.f32.xlu0 %v480_v12 }
 0x287   :  { %v366_v13 = vpop.xlane.xlu2 %365 }
 0x288   :  { %481 = vlog2.f32 %v366_v13 }
 0x28e   :  { %v482_v14 = vpop.eup %481 }
 0x28f   :  { %v382_v15 = vmul.f32 0.6931472, %v482_v14  ;;  %v368_v16 = vpop.xlane.xlu0 %367 }
 0x290   :  { %483 = vlog2.f32 %v368_v16 }
 0x291   :  { %v397_v17 = vadd.f32 %v382_v15, %v326_v45 }
 0x293   :  { %406 = vst.msk [vmem:[%s695_s7] sm:$0xff] %vm405_vm2, %v397_v17 }
 0x296   :  { %v484_v18 = vpop.eup %483 }
 0x297   :  { %v384_v19 = vmul.f32 0.6931472, %v484_v18  ;;  %v370_v20 = vpop.xlane.xlu1 %369 }
 0x298   :  { %485 = vlog2.f32 %v370_v20 }
 0x299   :  { %v398_v21 = vadd.f32 %v384_v19, %v328_v48 }
 0x29b   :  { %407 = vst.msk [vmem:[%s695_s7 + $0x8] sm:$0xff] %vm405_vm2, %v398_v21 }
 0x29e   :  { %v486_v22 = vpop.eup %485 }
 0x29f   :  { %v386_v23 = vmul.f32 0.6931472, %v486_v22  ;;  %v372_v24 = vpop.xlane.xlu2 %371 }
 0x2a0   :  { %487 = vlog2.f32 %v372_v24 }
 0x2a1   :  { %v399_v25 = vadd.f32 %v386_v23, %v330_v52 }
 0x2a3   :  { %408 = vst.msk [vmem:[%s695_s7 + $0x10] sm:$0xff] %vm405_vm2, %v399_v25 }
 0x2a6   :  { %v488_v26 = vpop.eup %487 }
 0x2a7   :  { %v388_v27 = vmul.f32 0.6931472, %v488_v26  ;;  %v374_v28 = vpop.xlane.xlu0 %373 }
 0x2a8   :  { %489 = vlog2.f32 %v374_v28 }
 0x2a9   :  { %v400_v29 = vadd.f32 %v388_v27, %v332_v56 }
 0x2ab   :  { %409 = vst.msk [vmem:[%s695_s7 + $0x18] sm:$0xff] %vm405_vm2, %v400_v29 }
 0x2ae   :  { %v490_v30 = vpop.eup %489 }
 0x2af   :  { %v390_v31 = vmul.f32 0.6931472, %v490_v30  ;;  %v376_v32 = vpop.xlane.xlu1 %375 }
 0x2b0   :  { %491 = vlog2.f32 %v376_v32 }
 0x2b1   :  { %v401_v33 = vadd.f32 %v390_v31, %v334_v60 }
 0x2b3   :  { %410 = vst.msk [vmem:[%s695_s7 + $0x20] sm:$0xff] %vm405_vm2, %v401_v33 }
 0x2b6   :  { %v492_v34 = vpop.eup %491 }
 0x2b7   :  { %v392_v35 = vmul.f32 0.6931472, %v492_v34 }
 0x2b9   :  { %v402_v36 = vadd.f32 %v392_v35, %v336_v0 }
 0x2bb   :  { %411 = vst.msk [vmem:[%s695_s7 + $0x28] sm:$0xff] %vm405_vm2, %v402_v36 }
 0x2bd   :  { %v378_v37 = vpop.xlane.xlu2 %377 }
 0x2be   :  { %493 = vlog2.f32 %v378_v37 }
 0x2c4   :  { %v494_v38 = vpop.eup %493 }
 0x2c5   :  { %v394_v39 = vmul.f32 0.6931472, %v494_v38  ;;  %v380_v40 = vpop.xlane.xlu0 %379 }
 0x2c6   :  { %495 = vlog2.f32 %v380_v40 }
 0x2c7   :  { %v403_v41 = vadd.f32 %v394_v39, %v338_v5 }
 0x2c9   :  { %412 = vst.msk [vmem:[%s695_s7 + $0x30] sm:$0xff] %vm405_vm2, %v403_v41 }
 0x2cc   :  { %v496_v42 = vpop.eup %495 }
 0x2cd   :  { %v396_v43 = vmul.f32 0.6931472, %v496_v42 }
 0x2cf   :  { %v404_v44 = vadd.f32 %v396_v43, %v340_v8 }
 0x2d1   :  { %413 = vst.msk [vmem:[%s695_s7 + $0x38] sm:$0xff] %vm405_vm2, %v404_v44 }
 0x2d2   :  { %418 = vsyncpa [#allocation3], 1 }

</bundles_post_ra>
